<compile_context>
chip_gen: v5e
topology: v5e:2x2
jax: 0.10.0
libtpu: 0.0.40
codegen_flags: <defaults>
</compile_context>

<pallas_src>
from functools import partial

import jax
import jax.numpy as jnp
import numpy as np
from jax.experimental import pallas as pl
from jax.experimental.pallas import tpu as pltpu

_LANES = 128


# -----------------------------------------------------------------------------
# Path 1: identity forward as a single HBM->HBM DMA (no VMEM streaming).
# -----------------------------------------------------------------------------
def _dma_identity_kernel(x_hbm_ref, o_hbm_ref, copy_sem):
    # `self.model(input)` hot path; with the model undefined the exact-semantics
    # op is the identity, realized as one whole-array DMA.
    cp = pltpu.make_async_copy(x_hbm_ref, o_hbm_ref, copy_sem)
    cp.start()
    cp.wait()


@jax.jit
def _identity_model(x: jax.Array) -> jax.Array:
    return pl.pallas_call(
        _dma_identity_kernel,
        out_shape=jax.ShapeDtypeStruct(x.shape, x.dtype),
        in_specs=[pl.BlockSpec(memory_space=pl.ANY)],
        out_specs=pl.BlockSpec(memory_space=pl.ANY),
        scratch_shapes=[pltpu.SemaphoreType.DMA],
    )(x)


def generator_forward(x: jax.Array) -> jax.Array:
    """Generator.forward(input) == self.model(input); model undefined -> identity."""
    if x.size == 0:  # avoid zero-sized DMA / zero-row tiling
        return x
    return _identity_model(x)


# -----------------------------------------------------------------------------
# Path 2: tiled VMEM pipeline scaffold (where a real `self.model` body plugs in).
# -----------------------------------------------------------------------------
def _sublane_multiple(dtype) -> int:
    # Native tile height: 8 rows for 4-byte, 16 for 2-byte, 32 for 1-byte dtypes
    # (sub-32-bit dtypes pack along sublanes).
    itemsize = jnp.dtype(dtype).itemsize
    return max(8, 32 // max(itemsize, 1))


def _round_up(n: int, m: int) -> int:
    return ((n + m - 1) // m) * m


def _vmem_capacity_bytes() -> int:
    try:
        cap = getattr(pltpu.get_tpu_info(), "vmem_capacity_bytes", None)
        if cap:
            return int(cap)
    except Exception:
        pass
    return 64 << 20  # conservative fallback: v7x per-core VMEM


def _streamed_model_kernel(x_ref, o_ref):
    # TODO(synk): a concrete `self.model` body would transform the tile here;
    # identity data path until the generator network is defined.
    o_ref[...] = x_ref[...]


@partial(jax.jit, static_argnums=(1, 2), donate_argnums=(0,))
def _streamed_impl(x, tile_rows: int, vmem_limit_bytes: int):
    orig_shape = x.shape
    total = x.size
    rows = pl.cdiv(total, _LANES)
    pad = rows * _LANES - total

    flat = x.reshape(-1)
    if pad:  # only when total % 128 != 0; common case is a pure reshape view
        flat = jnp.pad(flat, (0, pad))
    x2 = flat.reshape(rows, _LANES)

    spec = pl.BlockSpec((tile_rows, _LANES), lambda i: (i, 0))
    y2 = pl.pallas_call(
        _streamed_model_kernel,
        out_shape=jax.ShapeDtypeStruct((rows, _LANES), x.dtype),
        grid=(pl.cdiv(rows, tile_rows),),  # ragged final block is masked by Pallas
        in_specs=[spec],
        out_specs=spec,
        # In-place: output slab is the (donated) input slab; realized because the
        # caller donates x at the jit boundary.
        input_output_aliases={0: 0},
        compiler_params=pltpu.CompilerParams(
            dimension_semantics=("parallel",),  # shards grid across both TCs on v7x
            vmem_limit_bytes=vmem_limit_bytes,
        ),
    )(x2)

    y = y2.reshape(-1)
    if pad:
        y = y[:total]
    return y.reshape(orig_shape)


def streamed_model_forward(x: jax.Array) -> jax.Array:
    """Tiled VMEM-pipelined forward scaffold for a real `self.model` body.

    NOTE: donates `x` (writes back in place via input_output_aliases); callers
    must not reuse `x` after this call.
    """
    if x.size == 0:
        return x
    cap = _vmem_capacity_bytes()
    # ~4 MiB blocks (in+out double-buffered -> ~16 MiB live) fit the scoped VMEM
    # budgets of v5e/v6e/v7x; vmem_limit_bytes is raised explicitly to be safe.
    block_bytes = min(4 << 20, max(cap // 16, 512 << 10))
    vmem_limit = int(min(32 << 20, cap // 2))

    itemsize = jnp.dtype(x.dtype).itemsize
    sub = _sublane_multiple(x.dtype)
    rows = pl.cdiv(x.size, _LANES)
    max_tile_rows = max(sub, (block_bytes // (_LANES * itemsize)) // sub * sub)
    tile_rows = min(max_tile_rows, _round_up(rows, sub))
    return _streamed_impl(x, tile_rows, vmem_limit)


if __name__ == "__main__":
    key = jax.random.PRNGKey(0)
    # Small NCHW input consistent with a generic image-generator forward pass.
    x = jax.random.normal(key, (2, 4, 16, 16), dtype=jnp.float32)
    x_host = np.asarray(jax.device_get(x))

    # Module-accurate forward (identity, single HBM->HBM DMA).
    y = jax.block_until_ready(generator_forward(x))
    assert y.shape == x_host.shape
    assert y.dtype == x_host.dtype
    assert np.array_equal(np.asarray(jax.device_get(y)), x_host)

    # Streamed scaffold: ragged-row bf16 slab (dtype-aware tiles + masked final
    # grid block), then the f32 NCHW input.  Both calls donate their argument,
    # so host copies are taken first.
    xb = jax.random.normal(jax.random.PRNGKey(0), (2, 3, 20, 32), dtype=jnp.bfloat16)
    xb_host = np.asarray(jax.device_get(xb))
    yb = jax.block_until_ready(streamed_model_forward(xb))
    assert yb.shape == xb_host.shape
    assert yb.dtype == xb_host.dtype
    assert np.array_equal(
        np.asarray(jax.device_get(yb)).astype(np.float32),
        xb_host.astype(np.float32),
    )

    ys = jax.block_until_ready(streamed_model_forward(x))
    assert np.array_equal(np.asarray(jax.device_get(ys)), x_host)

    print("KERNEL_OK")
</pallas_src>

<mosaic_0001>
module attributes {stable_mosaic.version = 11 : i64} {
  func.func @_dma_identity_kernel(%arg0: memref<2x4x16x16xf32, #tpu.memory_space<any>>, %arg1: memref<2x4x16x16xf32, #tpu.memory_space<any>>, %arg2: memref<!tpu.dma_semaphore, #tpu.memory_space<semaphore_mem>>) attributes {dimension_semantics = [], scalar_prefetch = 0 : i64, scratch_operands = 1 : i64, tpu.core_type = #tpu.core_type<tc>} {
    tpu.enqueue_dma source(%arg0 : memref<2x4x16x16xf32, #tpu.memory_space<any>>) target(%arg1 : memref<2x4x16x16xf32, #tpu.memory_space<any>>) target_semaphore(%arg2 : memref<!tpu.dma_semaphore, #tpu.memory_space<semaphore_mem>>)
    tpu.wait_dma2 semaphore(%arg2 : memref<!tpu.dma_semaphore, #tpu.memory_space<semaphore_mem>>) src(%arg0 : memref<2x4x16x16xf32, #tpu.memory_space<any>>) dst(%arg1 : memref<2x4x16x16xf32, #tpu.memory_space<any>>)
    return
  }
}

</mosaic_0001>

<bundles_post_ra>
// kernel: _identity_model.1
= control target key start
LH: loop header
LB: loop body
LE: loop exit
PB: predicated region body
PF: predicated region fallthrough
CT: control target
= control target key end

     0   :  { %s34_s12 = smov [#allocation2]   ;;  %s35_s13 = smov [#allocation3]   ;;  %s53_s0 = inlined_call_operand.hbm [shape: f32[2,4,16,16], index: 0, kind: input, shape index: {}]   ;;  %s54_s1 = inlined_call_operand.hbm [shape: f32[2,4,16,16], index: 1, kind: output, shape index: {}]  }
   0x1   :  { %s10_s8 = sshll.u32 %s53_s0, 4  ;;  %s12_s11 = sshll.u32 %s54_s1, 4  ;;  %s11_s8 = int_to_ptr.hbm [resolvable:$true] %s10_s8  ;;  %s13_s11 = int_to_ptr.hbm [resolvable:$true] %s12_s11 }
   0x2   :  { %s36_s14 = smov 0  }
   0x3   :  { %16 = dma.general %s11_s8, 2048, %s13_s11, %s34_s12, %s35_s13, [#allocation4], %s36_s14, 0  }
   0x4   :  { %32 = dma.done.wait [#allocation2], 2048 }
   0x5   :  { %33 = vsyncadd [#allocation2], 4294965248 }
   0x6   :  { %22 = vsyncmov [#allocation2] }
   0x9   :  { %s23_s15 = vpop.sfrf %22 }
   0xa   :  { %p28_p0 = scmp.ne.s32.totalorder %s23_s15, 0 }
   0xc   :  { %27 = shalt.err (%p28_p0)  }

</bundles_post_ra>
